<compile_context>
chip_gen: v5e
topology: v5e:2x2
jax: 0.10.0
libtpu: 0.0.40
codegen_flags: <defaults>
</compile_context>

<pallas_src>
import jax
import jax.numpy as jnp
from jax.experimental import pallas as pl
from jax.experimental.pallas import tpu as pltpu


def local_decoder_kernel(x_ref, w1_ref, b1_ref, w2_ref, b2_ref, o_ref):
    # Layer 1: (tm, P*F_in) @ (P*F_in, P*H) on the MXU, f32 accumulation.
    h = jnp.dot(x_ref[...], w1_ref[...], preferred_element_type=jnp.float32)
    h = jnp.maximum(h + b1_ref[...], 0.0)            # bias + ReLU in f32
    # Layer 2: (tm, P*H) @ (P*H, P*Q), f32 accumulation.
    y = jnp.dot(h.astype(w2_ref.dtype), w2_ref[...],
                preferred_element_type=jnp.float32)
    y = jnp.maximum(y + b2_ref[...], 0.0)            # final ReLU (as in the PyTorch module)
    o_ref[...] = y.astype(o_ref.dtype)


def _round_up(a, b):
    return ((a + b - 1) // b) * b


def _block_diag_repeat(w, p):
    """w: (in, out) -> block-diagonal (p*in, p*out) with w repeated p times."""
    i, o = w.shape
    eye = jnp.eye(p, dtype=w.dtype)
    return jnp.einsum("ab,ij->aibj", eye, w).reshape(p * i, p * o)


def local_decoder(x, w1, b1, w2, b2, *, tm=1024, pack=None,
                  compute_dtype=jnp.bfloat16):
    """LocalDecoder forward.

    x : (..., in_features)
    w1: (hidden, in_features)   -- PyTorch nn.Linear layout (out, in)
    b1: (hidden,)
    w2: (quantiles, hidden)
    b2: (quantiles,)
    Returns (..., quantiles) in x.dtype.
    """
    orig_shape = x.shape
    f_in = orig_shape[-1]
    hid = w1.shape[0]
    q = w2.shape[0]
    out_dtype = x.dtype

    # Pack `pack` logical rows per packed row so the lane axis is dense.
    if pack is None:
        pack = max(1, 128 // f_in)

    # Pre-transpose to (in, out) and build block-diagonal packed weights.
    w1t = jnp.asarray(w1).T                              # (f_in, hid)
    w2t = jnp.asarray(w2).T                              # (hid, q)
    w1bd = _block_diag_repeat(w1t, pack).astype(compute_dtype)   # (P*f_in, P*hid)
    w2bd = _block_diag_repeat(w2t, pack).astype(compute_dtype)   # (P*hid,  P*q)
    b1t = jnp.tile(jnp.asarray(b1).reshape(1, hid), (1, pack)).astype(jnp.float32)
    b2t = jnp.tile(jnp.asarray(b2).reshape(1, q), (1, pack)).astype(jnp.float32)

    pf, ph, pq = pack * f_in, pack * hid, pack * q

    # Flatten leading dims, pad rows so the packed slab tiles evenly.
    x2d = x.reshape(-1, f_in)
    m = x2d.shape[0]
    mp = pl.cdiv(m, pack)                     # packed rows needed
    tm = max(8, _round_up(tm, 8))
    tm_eff = min(tm, _round_up(mp, 8))        # shrink tile for tiny inputs
    mp_pad = _round_up(mp, tm_eff)
    m_pad = mp_pad * pack

    x2d_pad = jnp.pad(x2d, ((0, m_pad - m), (0, 0)))
    x_packed = x2d_pad.reshape(mp_pad, pf).astype(compute_dtype)

    grid = (mp_pad // tm_eff,)

    out_packed = pl.pallas_call(
        local_decoder_kernel,
        out_shape=jax.ShapeDtypeStruct((mp_pad, pq), out_dtype),
        grid_spec=pl.GridSpec(
            grid=grid,
            in_specs=[
                pl.BlockSpec((tm_eff, pf), lambda i: (i, 0)),   # x tile
                pl.BlockSpec((pf, ph), lambda i: (0, 0)),       # W1_bd (resident)
                pl.BlockSpec((1, ph), lambda i: (0, 0)),        # b1 (resident)
                pl.BlockSpec((ph, pq), lambda i: (0, 0)),       # W2_bd (resident)
                pl.BlockSpec((1, pq), lambda i: (0, 0)),        # b2 (resident)
            ],
            out_specs=pl.BlockSpec((tm_eff, pq), lambda i: (i, 0)),
        ),
        compiler_params=pltpu.CompilerParams(
            dimension_semantics=("parallel",),   # shards the row axis across TCs on v7x
        ),
    )(x_packed, w1bd, b1t, w2bd, b2t)

    # Unpack: (mp_pad, P*q) -> (m_pad, q), trim padding, restore leading dims.
    out2d = out_packed.reshape(m_pad, q)[:m]
    return out2d.reshape(*orig_shape[:-1], q)


def reference(x2d, w1, b1, w2, b2):
    h = jnp.maximum(x2d @ w1.T + b1, 0.0)
    return jnp.maximum(h @ w2.T + b2, 0.0)


if __name__ == "__main__":
    # LocalDecoder(covariate_size=4, context_size=14, quantiles_size=5)
    covariate_size = 4
    context_size = 14
    quantiles_size = 5
    in_features = covariate_size + context_size * 2   # 32
    hidden = covariate_size * 3                       # 12

    key = jax.random.PRNGKey(0)
    k_x, k_w1, k_b1, k_w2, k_b2 = jax.random.split(key, 5)

    batch, seq = 2, 8
    x = jax.random.normal(k_x, (batch, seq, in_features), dtype=jnp.float32)
    # PyTorch nn.Linear layouts: weight (out, in), bias (out,)
    w1 = jax.random.normal(k_w1, (hidden, in_features), dtype=jnp.float32) * 0.1
    b1 = jax.random.normal(k_b1, (hidden,), dtype=jnp.float32) * 0.1
    w2 = jax.random.normal(k_w2, (quantiles_size, hidden), dtype=jnp.float32) * 0.1
    b2 = jax.random.normal(k_b2, (quantiles_size,), dtype=jnp.float32) * 0.1

    ref = reference(x.reshape(-1, in_features), w1, b1, w2, b2).reshape(
        batch, seq, quantiles_size)

    # 1) f32 compute path: the block-diagonal packing must be numerically exact.
    out_f32 = jax.block_until_ready(
        local_decoder(x, w1, b1, w2, b2, compute_dtype=jnp.float32))
    assert out_f32.shape == (batch, seq, quantiles_size)
    assert jnp.allclose(out_f32, ref, atol=1e-5, rtol=1e-5)

    # 2) Default bf16-MXU / f32-accumulate path (perf configuration).
    out_bf16 = jax.block_until_ready(local_decoder(x, w1, b1, w2, b2))
    assert out_bf16.shape == (batch, seq, quantiles_size)
    assert jnp.allclose(out_bf16, ref, atol=2e-2, rtol=2e-2)

    # 3) Odd row count + small tile: exercises wrapper padding/trim and a
    #    multi-step grid.
    x2 = jax.random.normal(jax.random.PRNGKey(1), (3, 13, in_features),
                           dtype=jnp.float32)
    ref2 = reference(x2.reshape(-1, in_features), w1, b1, w2, b2).reshape(
        3, 13, quantiles_size)
    out2 = jax.block_until_ready(
        local_decoder(x2, w1, b1, w2, b2, tm=8, compute_dtype=jnp.float32))
    assert out2.shape == (3, 13, quantiles_size)
    assert jnp.allclose(out2, ref2, atol=1e-5, rtol=1e-5)

    print("KERNEL_OK")
</pallas_src>

<mosaic_0001>
module attributes {stable_mosaic.version = 11 : i64} {
  func.func @local_decoder_kernel(%arg0: i32, %arg1: memref<8x128xf32, #tpu.memory_space<vmem>>, %arg2: memref<128x48xf32, #tpu.memory_space<vmem>>, %arg3: memref<1x48xf32, #tpu.memory_space<vmem>>, %arg4: memref<48x20xf32, #tpu.memory_space<vmem>>, %arg5: memref<1x20xf32, #tpu.memory_space<vmem>>, %arg6: memref<8x20xf32, #tpu.memory_space<vmem>>) attributes {dimension_semantics = [#tpu.dimension_semantics<parallel>], iteration_bounds = array<i64: 1>, scalar_prefetch = 0 : i64, scratch_operands = 0 : i64, tpu.core_type = #tpu.core_type<tc>, window_params = [{transform_indices = @transform_0, window_bounds = array<i64: 8, 128>}, {pipeline_mode = #tpu.pipeline_mode<synchronous>, transform_indices = @transform_1, window_bounds = array<i64: 128, 48>}, {pipeline_mode = #tpu.pipeline_mode<synchronous>, transform_indices = @transform_2, window_bounds = array<i64: 1, 48>}, {pipeline_mode = #tpu.pipeline_mode<synchronous>, transform_indices = @transform_3, window_bounds = array<i64: 48, 20>}, {pipeline_mode = #tpu.pipeline_mode<synchronous>, transform_indices = @transform_4, window_bounds = array<i64: 1, 20>}, {transform_indices = @transform_5, window_bounds = array<i64: 8, 20>}]} {
    %c0 = arith.constant 0 : index
    %c0_0 = arith.constant 0 : index
    %0 = vector.load %arg1[%c0, %c0_0] : memref<8x128xf32, #tpu.memory_space<vmem>>, vector<8x128xf32>
    %c0_1 = arith.constant 0 : index
    %c0_2 = arith.constant 0 : index
    %1 = vector.load %arg2[%c0_1, %c0_2] : memref<128x48xf32, #tpu.memory_space<vmem>>, vector<128x48xf32>
    %cst = arith.constant dense<0.000000e+00> : vector<8x48xf32>
    %2 = tpu.matmul %0, %1, %cst {dimension_numbers = #tpu.dot_dimension_numbers<[1], [0], [0], [1], [0, 0, 1, 1], [], []>} : vector<8x128xf32>, vector<128x48xf32>, vector<8x48xf32> -> vector<8x48xf32>
    %c0_3 = arith.constant 0 : index
    %c0_4 = arith.constant 0 : index
    %3 = vector.load %arg3[%c0_3, %c0_4] : memref<1x48xf32, #tpu.memory_space<vmem>>, vector<1x48xf32>
    %4 = vector.broadcast %3 : vector<1x48xf32> to vector<8x48xf32>
    %5 = arith.addf %2, %4 : vector<8x48xf32>
    %cst_5 = arith.constant 0.000000e+00 : f32
    %6 = vector.broadcast %cst_5 : f32 to vector<8x48xf32>
    %7 = arith.maximumf %5, %6 : vector<8x48xf32>
    %c0_6 = arith.constant 0 : index
    %c0_7 = arith.constant 0 : index
    %8 = vector.load %arg4[%c0_6, %c0_7] : memref<48x20xf32, #tpu.memory_space<vmem>>, vector<48x20xf32>
    %cst_8 = arith.constant dense<0.000000e+00> : vector<8x20xf32>
    %9 = tpu.matmul %7, %8, %cst_8 {dimension_numbers = #tpu.dot_dimension_numbers<[1], [0], [0], [1], [0, 0, 1, 1], [], []>} : vector<8x48xf32>, vector<48x20xf32>, vector<8x20xf32> -> vector<8x20xf32>
    %c0_9 = arith.constant 0 : index
    %c0_10 = arith.constant 0 : index
    %10 = vector.load %arg5[%c0_9, %c0_10] : memref<1x20xf32, #tpu.memory_space<vmem>>, vector<1x20xf32>
    %11 = vector.broadcast %10 : vector<1x20xf32> to vector<8x20xf32>
    %12 = arith.addf %9, %11 : vector<8x20xf32>
    %cst_11 = arith.constant 0.000000e+00 : f32
    %13 = vector.broadcast %cst_11 : f32 to vector<8x20xf32>
    %14 = arith.maximumf %12, %13 : vector<8x20xf32>
    %c0_12 = arith.constant 0 : index
    %c0_13 = arith.constant 0 : index
    %15 = vector.load %arg6[%c0_12, %c0_13] : memref<8x20xf32, #tpu.memory_space<vmem>>, vector<8x20xf32>
    tpu.vector_store %arg6[%c0_12, %c0_13], %14 {strides = array<i32>} : memref<8x20xf32, #tpu.memory_space<vmem>>, vector<8x20xf32>,
    return
  }
  func.func @transform_0(%arg0: i32) -> (i32, i32) {
    %c0_i32 = arith.constant 0 : i32
    %c0_i32_0 = arith.constant 0 : i32
    return %arg0, %c0_i32 : i32, i32
  }
  func.func @transform_1(%arg0: i32) -> (i32, i32) {
    %c0_i32 = arith.constant 0 : i32
    %c0_i32_0 = arith.constant 0 : i32
    %c0_i32_1 = arith.constant 0 : i32
    return %c0_i32, %c0_i32_0 : i32, i32
  }
  func.func @transform_2(%arg0: i32) -> (i32, i32) {
    %c0_i32 = arith.constant 0 : i32
    %c0_i32_0 = arith.constant 0 : i32
    %c0_i32_1 = arith.constant 0 : i32
    return %c0_i32, %c0_i32_0 : i32, i32
  }
  func.func @transform_3(%arg0: i32) -> (i32, i32) {
    %c0_i32 = arith.constant 0 : i32
    %c0_i32_0 = arith.constant 0 : i32
    %c0_i32_1 = arith.constant 0 : i32
    return %c0_i32, %c0_i32_0 : i32, i32
  }
  func.func @transform_4(%arg0: i32) -> (i32, i32) {
    %c0_i32 = arith.constant 0 : i32
    %c0_i32_0 = arith.constant 0 : i32
    %c0_i32_1 = arith.constant 0 : i32
    return %c0_i32, %c0_i32_0 : i32, i32
  }
  func.func @transform_5(%arg0: i32) -> (i32, i32) {
    %c0_i32 = arith.constant 0 : i32
    %c0_i32_0 = arith.constant 0 : i32
    return %arg0, %c0_i32 : i32, i32
  }
}

</mosaic_0001>

<bundles_post_ra>
// kernel: tpu_custom_call.1
= control target key start
LH: loop header
LB: loop body
LE: loop exit
PB: predicated region body
PF: predicated region fallthrough
CT: control target
= control target key end

     0   :  { %s255_s0 = inlined_call_operand.vmem [shape: f32[8,128], index: 0, kind: input, shape index: {}]   ;;  %s256_s1 = inlined_call_operand.vmem [shape: f32[128,48], index: 1, kind: input, shape index: {}]   ;;  %s257_s2 = inlined_call_operand.vmem [shape: f32[1,48], index: 2, kind: input, shape index: {}]   ;;  %s258_s3 = inlined_call_operand.vmem [shape: f32[48,20], index: 3, kind: input, shape index: {}]   ;;  %s259_s4 = inlined_call_operand.vmem [shape: f32[1,20], index: 4, kind: input, shape index: {}]   ;;  %s260_s5 = inlined_call_operand.hbm [shape: f32[8,20], index: 5, kind: output, shape index: {}]  }
   0x1   :  { %v37_v0 = vld [vmem:[%s256_s1 + $0x78] sm:$0xff]  ;;  %v36_v1 = vld [vmem:[%s256_s1 + $0x70] sm:$0xff]  ;;  %v35_v2 = vld [vmem:[%s256_s1 + $0x68] sm:$0xff] }
   0x2   :  { %42 = vmatpush.msra.mxu0 %v37_v0  ;;  %v34_v3 = vld [vmem:[%s256_s1 + $0x60] sm:$0xff]  ;;  %v68_v4 = vld [vmem:[%s258_s3 + $0x28] sm:$0xff]  ;;  %v33_v5 = vld [vmem:[%s256_s1 + $0x58] sm:$0xff] }
   0x3   :  { %87 = vmatpush.msra.mxu1 %v68_v4  ;;  %v67_v6 = vld [vmem:[%s258_s3 + $0x20] sm:$0xff]  ;;  %v66_v7 = vld [vmem:[%s258_s3 + $0x18] sm:$0xff] }
   0x4   :  { %43 = vmatpush.msra.mxu0 %v36_v1 }
   0x6   :  { %44 = vmatpush.msra.mxu0 %v35_v2 }
   0x8   :  { %45 = vmatpush.msra.mxu0 %v34_v3 }
   0x9   :  { %10 = vsyncpa [#allocation3], 0  ;;  %v32_v8 = vld [vmem:[%s256_s1 + $0x50] sm:$0xff]  ;;  %88 = vmatpush.msra.mxu1 %v67_v6  ;;  %v31_v9 = vld [vmem:[%s256_s1 + $0x48] sm:$0xff]  ;;  %vm73_vm0 = vcmask 392192   ;;  %s146_s16 = smov [#allocation2]  }
   0xa   :  { %46 = vmatpush.msra.mxu0 %v33_v5  ;;  %v30_v10 = vld [vmem:[%s256_s1 + $0x40] sm:$0xff]  ;;  %v29_v11 = vld [vmem:[%s256_s1 + $0x38] sm:$0xff]  ;;  %v28_v12 = vld [vmem:[%s256_s1 + $0x30] sm:$0xff]  ;;  %s105_s17 = sshll.u32 %s146_s16, 4  ;;  %vm98_vm1 = vcmask 162816   ;;  %s106_s17 = int_to_ptr.vmem [resolvable:$true] %s105_s17 }
   0xb   :  { %89 = vmatpush.msra.mxu1 %v66_v7  ;;  %v27_v13 = vld [vmem:[%s256_s1 + $0x28] sm:$0xff]  ;;  %v26_v14 = vld [vmem:[%s256_s1 + $0x20] sm:$0xff]  ;;  %v25_v15 = vld [vmem:[%s256_s1 + $0x18] sm:$0xff] }
   0xc   :  { %47 = vmatpush.msra.mxu0 %v32_v8  ;;  %v24_v16 = vld [vmem:[%s256_s1 + $0x10] sm:$0xff]  ;;  %v23_v17 = vld [vmem:[%s256_s1 + $0x8] sm:$0xff]  ;;  %v22_v18 = vld [vmem:[%s256_s1] sm:$0xff] }
   0xd   :  { %v21_v19 = vld [vmem:[%s255_s0] sm:$0xff]  ;;  %v65_v20 = vld [vmem:[%s258_s3 + $0x10] sm:$0xff]  ;;  %v64_v21 = vld [vmem:[%s258_s3 + $0x8] sm:$0xff] }
   0xe   :  { %48 = vmatpush.msra.mxu0 %v31_v9  ;;  %90 = vmatpush.msra.mxu1 %v65_v20  ;;  %v63_v22 = vld [vmem:[%s258_s3] sm:$0xff]  ;;  %s107_s3 = sshll.u32 %s260_s5, 4  ;;  %s108_s3 = int_to_ptr.hbm [resolvable:$true] %s107_s3 }
   0xf   :  { %v118_v23 = vld [vmem:[%s257_s2] ss:$0 sm:$0xff] }
  0x10   :  { %49 = vmatpush.msra.mxu0 %v30_v10  ;;  %91 = vmatpush.msra.mxu1 %v64_v21  ;;  %v119_v27 = vld [vmem:[%s259_s4] ss:$0 sm:$0xff] }
  0x12   :  { %50 = vmatpush.msra.mxu0 %v29_v11  ;;  %92 = vmatpush.msra.mxu1 %v63_v22 }
  0x14   :  { %51 = vmatpush.msra.mxu0 %v28_v12 }
  0x16   :  { %52 = vmatpush.msra.mxu0 %v27_v13 }
  0x18   :  { %53 = vmatpush.msra.mxu0 %v26_v14 }
  0x1a   :  { %54 = vmatpush.msra.mxu0 %v25_v15 }
  0x1c   :  { %55 = vmatpush.msra.mxu0 %v24_v16 }
  0x1e   :  { %56 = vmatpush.msra.mxu0 %v23_v17 }
  0x20   :  { %57 = vmatpush.msra.mxu0 %v22_v18 }
  0x21   :  { %58 = vmatmul.f32.vlgmr.msra.gmra.mxu0 %v21_v19 }
  0x9e   :  { %v59_v24 = vpop.f32.mrf.mxu0 }
  0x9f   :  { %v60_v25 = vadd.f32 %v118_v23, %v59_v24 }
  0xa1   :  { %v62_v26 = vmax.f32 %v60_v25, 0.0 }
  0xa3   :  { %116 = vmatmul.msk.f32.vlgmr.msra.gmra.mxu1 %vm73_vm0, %v62_v26 }
 0x120   :  { %v94_v28 = vpop.f32.mrf.mxu1 }
 0x121   :  { %v95_v29 = vadd.f32 %v119_v27, %v94_v28 }
 0x123   :  { %v97_v30 = vmax.f32 %v95_v29, 0.0 }
 0x125   :  { %99 = vst.msk [vmem:[#allocation2] sm:$0xff] %vm98_vm1, %v97_v30 }
 0x126   :  { %110 = dma.vmem_to_hbm [thread:$0]  %s106_s17, 128, %s108_s3, [#allocation3]  }
 0x127   :  { %144 = dma.done.wait [#allocation3], 128  }
 0x128   :  { %145 = vsyncadd [#allocation3], 4294967168 }
 0x129   :  { %115 = vsyncpa [#allocation3], 1 }

</bundles_post_ra>
